<compile_context>
chip_gen: v6e
topology: v6e:2x2x1
jax: 0.10.0
libtpu: 0.0.40
codegen_flags: <defaults>
</compile_context>

<pallas_src>
import jax
import jax.numpy as jnp
import numpy as np
from jax import lax
from jax.experimental import pallas as pl
from jax.experimental.pallas import tpu as pltpu


def _pick_row_tile(n):
    """Largest MXU-friendly row tile dividing N (TN == N at toy sizes)."""
    for t in (512, 256, 128, 64, 32, 16, 8):
        if n >= t and n % t == 0:
            return t
    return n


def _make_kernel(B, C, O, TN, linear_first, mxu_dtype, exp_dtype):
    def kernel(e_ref, x_ref, wt_ref, bias_ref, out_ref, *scratch):
        # Row block handled by this grid step.
        row0 = pl.multiple_of(pl.program_id(0) * TN, TN)

        # supports[rows] = softmax(relu(E[rows] @ E^T), axis=1).
        # Each (TN, N) tile holds complete softmax rows -> plain row tiling.
        e_full = e_ref[...].astype(mxu_dtype)                        # (N, D)
        e_rows = e_ref[pl.ds(row0, TN), :].astype(mxu_dtype)         # (TN, D)
        logits = lax.dot_general(
            e_rows, e_full,
            dimension_numbers=(((1,), (1,)), ((), ())),
            preferred_element_type=jnp.float32)                      # (TN, N)
        logits = jnp.maximum(logits, 0.0)
        m = jnp.max(logits, axis=1, keepdims=True)
        p = jnp.exp((logits - m).astype(exp_dtype))                  # EUP
        denom = jnp.sum(p.astype(jnp.float32), axis=1, keepdims=True)
        inv = pl.reciprocal(denom, approx=True)                      # (TN, 1)
        s_rows = (p * inv.astype(p.dtype)).astype(mxu_dtype)         # (TN, N)

        wt = wt_ref[...].astype(mxu_dtype)                           # (C, O)
        bias = bias_ref[...]                                         # (1, B*O)

        if not linear_first:
            # Graph conv first (O >= C): x_g[rows] = x[rows] + S[rows] @ x as
            # ONE (TN,N)@(N,B*C) MXU dot, then the shared linear per batch.
            x_full = x_ref[...]                                      # (N, B*C)
            x_rows = x_ref[pl.ds(row0, TN), :]                       # (TN, B*C)
            xg = x_rows + jnp.dot(s_rows, x_full.astype(mxu_dtype),
                                  preferred_element_type=jnp.float32)
            xg_m = xg.astype(mxu_dtype)
            for b in range(B):
                ob = jnp.dot(xg_m[:, b * C:(b + 1) * C], wt,
                             preferred_element_type=jnp.float32)
                ob = ob + bias[:, b * O:(b + 1) * O]
                out_ref[:, b * O:(b + 1) * O] = ob.astype(out_ref.dtype)
        else:
            # Linear first (O < C): Y = x @ W^T per batch, assembled into a
            # lane-folded (N, B*O) VMEM slab, then out[rows] = Y[rows] +
            # S[rows] @ Y + b with the dominant dot over the narrower B*O
            # lanes.  (Y is cheap; its per-row-block recompute is negligible
            # next to the N^2-scaled dot it shrinks.)
            y_scr, = scratch                                         # (N, B*O)
            x_m = x_ref[...].astype(mxu_dtype)                       # (N, B*C)
            for b in range(B):
                yb = jnp.dot(x_m[:, b * C:(b + 1) * C], wt,
                             preferred_element_type=jnp.float32)     # (N, O)
                y_scr[:, b * O:(b + 1) * O] = yb
            y_full = y_scr[...]                                      # (N, B*O)
            y_rows = y_scr[pl.ds(row0, TN), :]                       # (TN, B*O)
            out = y_rows + jnp.dot(s_rows, y_full.astype(mxu_dtype),
                                   preferred_element_type=jnp.float32)
            out_ref[...] = (out + bias).astype(out_ref.dtype)

    return kernel


def embgcn_linear_forward(x, node_embeddings, weight, bias, *,
                          mxu_dtype=jnp.bfloat16, exp_dtype=None):
    """x: (B, N, C); node_embeddings: (N, D);
    weight: (O, C) (torch nn.Linear layout); bias: (O,)  ->  (B, N, O).

    mxu_dtype: dtype fed to the MXU matmuls (accumulation is always f32).
    exp_dtype: dtype for the softmax exp; defaults to mxu_dtype.  Use
               jnp.float32 on v5e (no bf16 EUP there)."""
    B, N, C = x.shape
    O, C2 = weight.shape
    assert C2 == C
    N2, D = node_embeddings.shape
    assert N2 == N
    if exp_dtype is None:
        exp_dtype = mxu_dtype

    # Order rule: contract the dominant (rows, N)@(N, lanes) dot over the
    # smaller of B*C (graph conv first) vs B*O (linear first).
    linear_first = O < C
    TN = _pick_row_tile(N)
    grid = (N // TN,)

    # Wrapper-side layout plumbing only (no compute hoisted out of the
    # kernel): fold the batch into the lane dim so the graph conv is a single
    # MXU dot per row block.
    xt = jnp.transpose(x, (1, 0, 2)).reshape(N, B * C)               # (N, B*C)
    wt = weight.T                                                    # (C, O)
    bias_t = jnp.tile(bias, B).reshape(1, B * O)                     # (1, B*O)

    kernel = _make_kernel(B, C, O, TN, linear_first, mxu_dtype, exp_dtype)
    scratch_shapes = ([pltpu.VMEM((N, B * O), jnp.float32)]
                      if linear_first else [])

    # Output stays f32 to match the reference; emit bf16 here if the consumer
    # tolerates it (halves HBM writeback of the (N, B*O) slab).
    out2d = pl.pallas_call(
        kernel,
        out_shape=jax.ShapeDtypeStruct((N, B * O), jnp.float32),
        grid=grid,
        in_specs=[
            pl.BlockSpec((N, D), lambda i: (0, 0)),        # E       (invariant)
            pl.BlockSpec((N, B * C), lambda i: (0, 0)),    # x slab  (invariant)
            pl.BlockSpec((C, O), lambda i: (0, 0)),        # W^T     (invariant)
            pl.BlockSpec((1, B * O), lambda i: (0, 0)),    # bias    (invariant)
        ],
        out_specs=pl.BlockSpec((TN, B * O), lambda i: (i, 0)),
        scratch_shapes=scratch_shapes,
        compiler_params=pltpu.CompilerParams(
            dimension_semantics=("parallel",),             # row blocks -> 2 TCs on v7x
            vmem_limit_bytes=32 * 1024 * 1024),
    )(node_embeddings, xt, wt, bias_t)

    # Lane-folded (N, B*O) slab -> (B, N, O).
    return jnp.transpose(out2d.reshape(N, B, O), (1, 0, 2))


def embgcn_linear_reference(x, E, weight, bias):
    """Pure-JAX f32 reference mirroring the PyTorch forward exactly."""
    N = E.shape[0]
    supports = jax.nn.softmax(jax.nn.relu(E @ E.T), axis=1)
    supports = jnp.eye(N, dtype=supports.dtype) + supports
    x_g = jnp.einsum('nm,bmc->bnc', supports, x)
    return x_g @ weight.T + bias


if __name__ == "__main__":
    # Small shapes consistent with the module (cheb_k / adj / embed_dim are
    # stored in __init__ but never used by forward()).
    B, N = 2, 16
    dim_in, dim_out, embed_dim = 4, 8, 8

    key = jax.random.PRNGKey(0)
    k1, k2, k3, k4 = jax.random.split(key, 4)
    x = jax.random.normal(k1, (B, N, dim_in), dtype=jnp.float32)
    node_embeddings = jax.random.normal(k2, (N, embed_dim), dtype=jnp.float32)
    # nn.Linear(dim_in, dim_out): weight (dim_out, dim_in), bias (dim_out,)
    weight = 0.1 * jax.random.normal(k3, (dim_out, dim_in), dtype=jnp.float32)
    bias = 0.1 * jax.random.normal(k4, (dim_out,), dtype=jnp.float32)

    ref = embgcn_linear_reference(x, node_embeddings, weight, bias)

    # 1) f32 MXU path (graph-conv-first branch, O > C): authoritative parity
    #    check against the f32 reference (approx reciprocal -> small slack).
    out_f32 = jax.block_until_ready(
        embgcn_linear_forward(x, node_embeddings, weight, bias,
                              mxu_dtype=jnp.float32))
    assert out_f32.shape == (B, N, dim_out)
    assert np.allclose(np.asarray(out_f32), np.asarray(ref),
                       rtol=5e-3, atol=5e-3), "f32-path mismatch vs reference"

    # 2) Default bf16-MXU / bf16-exp perf path: looser tolerance (bf16 inputs
    #    to a softmax-amplified matmul drift a few percent; exactness is
    #    already established by the f32 run above).
    out_bf16 = jax.block_until_ready(
        embgcn_linear_forward(x, node_embeddings, weight, bias))
    assert out_bf16.shape == (B, N, dim_out)
    assert np.allclose(np.asarray(out_bf16), np.asarray(ref),
                       rtol=1e-1, atol=5e-2), "bf16-path mismatch vs reference"

    # 3) O < C exercises the linear-first branch of the matmul-order rule.
    dim_out_small = 2
    k5, k6 = jax.random.split(k4)
    w_small = 0.1 * jax.random.normal(k5, (dim_out_small, dim_in), jnp.float32)
    b_small = 0.1 * jax.random.normal(k6, (dim_out_small,), jnp.float32)
    ref_small = embgcn_linear_reference(x, node_embeddings, w_small, b_small)
    out_small = jax.block_until_ready(
        embgcn_linear_forward(x, node_embeddings, w_small, b_small,
                              mxu_dtype=jnp.float32))
    assert out_small.shape == (B, N, dim_out_small)
    assert np.allclose(np.asarray(out_small), np.asarray(ref_small),
                       rtol=5e-3, atol=5e-3), "linear-first path mismatch"

    print("KERNEL_OK")
</pallas_src>

<mosaic_0001>
module attributes {stable_mosaic.version = 11 : i64} {
  func.func @kernel(%arg0: i32, %arg1: memref<16x8xf32, #tpu.memory_space<vmem>>, %arg2: memref<16x8xf32, #tpu.memory_space<vmem>>, %arg3: memref<4x8xf32, #tpu.memory_space<vmem>>, %arg4: memref<1x16xf32, #tpu.memory_space<vmem>>, %arg5: memref<16x16xf32, #tpu.memory_space<vmem>>) attributes {dimension_semantics = [#tpu.dimension_semantics<parallel>], iteration_bounds = array<i64: 1>, scalar_prefetch = 0 : i64, scratch_operands = 0 : i64, tpu.core_type = #tpu.core_type<tc>, window_params = [{pipeline_mode = #tpu.pipeline_mode<synchronous>, transform_indices = @transform_0, window_bounds = array<i64: 16, 8>}, {pipeline_mode = #tpu.pipeline_mode<synchronous>, transform_indices = @transform_1, window_bounds = array<i64: 16, 8>}, {pipeline_mode = #tpu.pipeline_mode<synchronous>, transform_indices = @transform_2, window_bounds = array<i64: 4, 8>}, {pipeline_mode = #tpu.pipeline_mode<synchronous>, transform_indices = @transform_3, window_bounds = array<i64: 1, 16>}, {transform_indices = @transform_4, window_bounds = array<i64: 16, 16>}]} {
    %c16_i32 = arith.constant 16 : i32
    %0 = arith.muli %arg0, %c16_i32 : i32
    %1 = tpu.assume_multiple %0, 16 : i32
    %c0 = arith.constant 0 : index
    %c0_0 = arith.constant 0 : index
    %2 = vector.load %arg1[%c0, %c0_0] : memref<16x8xf32, #tpu.memory_space<vmem>>, vector<16x8xf32>
    %3 = arith.index_cast %1 : i32 to index
    %c0_1 = arith.constant 0 : index
    %4 = vector.load %arg1[%3, %c0_1] : memref<16x8xf32, #tpu.memory_space<vmem>>, vector<16x8xf32>
    %cst = arith.constant dense<0.000000e+00> : vector<16x16xf32>
    %5 = tpu.matmul %4, %2, %cst {dimension_numbers = #tpu.dot_dimension_numbers<[1], [1], [0], [0], [0, 0, 1, 0], [], []>} : vector<16x8xf32>, vector<16x8xf32>, vector<16x16xf32> -> vector<16x16xf32>
    %cst_2 = arith.constant 0.000000e+00 : f32
    %6 = vector.broadcast %cst_2 : f32 to vector<16x16xf32>
    %7 = arith.maximumf %5, %6 : vector<16x16xf32>
    %cst_3 = arith.constant dense<0xFF800000> : vector<16xf32>
    %8 = vector.multi_reduction <maximumf>, %7, %cst_3 [1] : vector<16x16xf32> to vector<16xf32>
    %9 = vector.shape_cast %8 : vector<16xf32> to vector<16x1xf32>
    %10 = vector.broadcast %9 : vector<16x1xf32> to vector<16x16xf32>
    %11 = arith.subf %7, %10 : vector<16x16xf32>
    %12 = math.exp %11 : vector<16x16xf32>
    %cst_4 = arith.constant dense<0.000000e+00> : vector<16xf32>
    %13 = vector.multi_reduction <add>, %12, %cst_4 [1] : vector<16x16xf32> to vector<16xf32>
    %14 = vector.shape_cast %13 : vector<16xf32> to vector<16x1xf32>
    %15 = tpu.reciprocal %14 {approx = true} : vector<16x1xf32> -> vector<16x1xf32>
    %16 = vector.broadcast %15 : vector<16x1xf32> to vector<16x16xf32>
    %17 = arith.mulf %12, %16 : vector<16x16xf32>
    %c0_5 = arith.constant 0 : index
    %c0_6 = arith.constant 0 : index
    %18 = vector.load %arg3[%c0_5, %c0_6] : memref<4x8xf32, #tpu.memory_space<vmem>>, vector<4x8xf32>
    %c0_7 = arith.constant 0 : index
    %c0_8 = arith.constant 0 : index
    %19 = vector.load %arg4[%c0_7, %c0_8] : memref<1x16xf32, #tpu.memory_space<vmem>>, vector<1x16xf32>
    %c0_9 = arith.constant 0 : index
    %c0_10 = arith.constant 0 : index
    %20 = vector.load %arg2[%c0_9, %c0_10] : memref<16x8xf32, #tpu.memory_space<vmem>>, vector<16x8xf32>
    %21 = arith.index_cast %1 : i32 to index
    %c0_11 = arith.constant 0 : index
    %22 = vector.load %arg2[%21, %c0_11] : memref<16x8xf32, #tpu.memory_space<vmem>>, vector<16x8xf32>
    %cst_12 = arith.constant dense<0.000000e+00> : vector<16x8xf32>
    %23 = tpu.matmul %17, %20, %cst_12 {dimension_numbers = #tpu.dot_dimension_numbers<[1], [0], [0], [1], [0, 0, 1, 1], [], []>} : vector<16x16xf32>, vector<16x8xf32>, vector<16x8xf32> -> vector<16x8xf32>
    %24 = arith.addf %22, %23 : vector<16x8xf32>
    %25 = vector.extract_strided_slice %24 {offsets = [0, 0], sizes = [16, 4], strides = [1, 1]} : vector<16x8xf32> to vector<16x4xf32>
    %cst_13 = arith.constant dense<0.000000e+00> : vector<16x8xf32>
    %26 = tpu.matmul %25, %18, %cst_13 {dimension_numbers = #tpu.dot_dimension_numbers<[1], [0], [0], [1], [0, 0, 1, 1], [], []>} : vector<16x4xf32>, vector<4x8xf32>, vector<16x8xf32> -> vector<16x8xf32>
    %27 = vector.extract_strided_slice %19 {offsets = [0, 0], sizes = [1, 8], strides = [1, 1]} : vector<1x16xf32> to vector<1x8xf32>
    %28 = vector.broadcast %27 : vector<1x8xf32> to vector<16x8xf32>
    %29 = arith.addf %26, %28 : vector<16x8xf32>
    %c0_14 = arith.constant 0 : index
    %c0_15 = arith.constant 0 : index
    %30 = vector.load %arg5[%c0_14, %c0_15] : memref<16x16xf32, #tpu.memory_space<vmem>>, vector<16x8xf32>
    tpu.vector_store %arg5[%c0_14, %c0_15], %29 {strides = array<i32>} : memref<16x16xf32, #tpu.memory_space<vmem>>, vector<16x8xf32>,
    %31 = vector.extract_strided_slice %24 {offsets = [0, 4], sizes = [16, 4], strides = [1, 1]} : vector<16x8xf32> to vector<16x4xf32>
    %cst_16 = arith.constant dense<0.000000e+00> : vector<16x8xf32>
    %32 = tpu.matmul %31, %18, %cst_16 {dimension_numbers = #tpu.dot_dimension_numbers<[1], [0], [0], [1], [0, 0, 1, 1], [], []>} : vector<16x4xf32>, vector<4x8xf32>, vector<16x8xf32> -> vector<16x8xf32>
    %33 = vector.extract_strided_slice %19 {offsets = [0, 8], sizes = [1, 8], strides = [1, 1]} : vector<1x16xf32> to vector<1x8xf32>
    %34 = vector.broadcast %33 : vector<1x8xf32> to vector<16x8xf32>
    %35 = arith.addf %32, %34 : vector<16x8xf32>
    %c0_17 = arith.constant 0 : index
    %c8 = arith.constant 8 : index
    %36 = vector.load %arg5[%c0_17, %c8] : memref<16x16xf32, #tpu.memory_space<vmem>>, vector<16x8xf32>
    tpu.vector_store %arg5[%c0_17, %c8], %35 {strides = array<i32>} : memref<16x16xf32, #tpu.memory_space<vmem>>, vector<16x8xf32>,
    return
  }
  func.func @transform_0(%arg0: i32) -> (i32, i32) {
    %c0_i32 = arith.constant 0 : i32
    %c0_i32_0 = arith.constant 0 : i32
    %c0_i32_1 = arith.constant 0 : i32
    return %c0_i32, %c0_i32_0 : i32, i32
  }
  func.func @transform_1(%arg0: i32) -> (i32, i32) {
    %c0_i32 = arith.constant 0 : i32
    %c0_i32_0 = arith.constant 0 : i32
    %c0_i32_1 = arith.constant 0 : i32
    return %c0_i32, %c0_i32_0 : i32, i32
  }
  func.func @transform_2(%arg0: i32) -> (i32, i32) {
    %c0_i32 = arith.constant 0 : i32
    %c0_i32_0 = arith.constant 0 : i32
    %c0_i32_1 = arith.constant 0 : i32
    return %c0_i32, %c0_i32_0 : i32, i32
  }
  func.func @transform_3(%arg0: i32) -> (i32, i32) {
    %c0_i32 = arith.constant 0 : i32
    %c0_i32_0 = arith.constant 0 : i32
    %c0_i32_1 = arith.constant 0 : i32
    return %c0_i32, %c0_i32_0 : i32, i32
  }
  func.func @transform_4(%arg0: i32) -> (i32, i32) {
    %c0_i32 = arith.constant 0 : i32
    %c0_i32_0 = arith.constant 0 : i32
    return %arg0, %c0_i32 : i32, i32
  }
}

</mosaic_0001>

<bundles_post_ra>
// kernel: tpu_custom_call.1
= control target key start
LH: loop header
LB: loop body
LE: loop exit
PB: predicated region body
PF: predicated region fallthrough
CT: control target
= control target key end

     0   :  { %vm24_vm0 = vcmask 64512   ;;  %s585_s0 = inlined_call_operand.vmem [shape: f32[16,8], index: 0, kind: input, shape index: {}]   ;;  %s586_s1 = inlined_call_operand.vmem [shape: f32[16,8], index: 1, kind: input, shape index: {}]   ;;  %s587_s2 = inlined_call_operand.vmem [shape: f32[4,8], index: 2, kind: input, shape index: {}]   ;;  %s588_s3 = inlined_call_operand.vmem [shape: f32[1,16], index: 3, kind: input, shape index: {}]   ;;  %s589_s4 = inlined_call_operand.hbm [shape: f32[16,16], index: 4, kind: output, shape index: {}]  }
   0x1   :  { %v20_v0 = vld [vmem:[%s585_s0 + $0x8] sm:$0xff]  ;;  %v19_v1 = vld [vmem:[%s585_s0] sm:$0xff] }
   0x2   :  { %9 = vsyncpa [#allocation3], 0  ;;  %461 = vmatprep.subr.msk.mxu0 %vm24_vm0, %v20_v0  ;;  %465 = vmatprep.mubr.msk.f32.mxu0 %vm24_vm0, %v19_v1  ;;  %vm114_vm1 = vcmask 130048   ;;  %v140_v18 = vld [vmem:[%s586_s1 + $0x8] sm:$0xff]  ;;  %v139_v19 = vld [vmem:[%s586_s1] sm:$0xff]  ;;  %vm240_vm2 = vcmask 1043456  }
   0x3   :  { %462 = vmatpush3.xpose.msk.msra.mxu0 %vm24_vm0, %v20_v0  ;;  %468 = vmatprep.subr.mxu1 %v140_v18  ;;  %v137_v26 = vld [vmem:[%s587_s2] sm:$0xf]  ;;  %vm233_vm3 = vcmask 31744   ;;  %s520_s1 = smov 124   ;;  %s521_s2 = smov 120   ;;  %vm415_vm4 = vcmask 130112  }
   0x4   :  { %463 = vmatprep.subr.msk.mxu0 %vm24_vm0, %v19_v1  ;;  %469 = vmatpush3.msra.mxu1 %v140_v18  ;;  %v440_v31 = vld [vmem:[%s588_s3] ss:$0 sm:$0xff]  ;;  %s522_s3 = smov 8   ;;  %s523_s26 = smov [#allocation2]  }
   0x5   :  { %470 = vmatprep.subr.mxu1 %v139_v19  ;;  %s423_s27 = sshll.u32 %s523_s26, 4  ;;  %s424_s27 = int_to_ptr.vmem [resolvable:$true] %s423_s27 }
   0x6   :  { %471 = vmatpush3.msra.mxu1 %v139_v19  ;;  %s498_s28 = scalar_lea.vmem %s424_s27, 256  ;;  %p503_p1 = scmp.lt.s32.totalorder %s424_s27, %s424_s27 }
   0x7   :  { %464 = vmatpush3.xpose.msk.msra.mxu0 %vm24_vm0, %v19_v1  ;;  %475 = vmatprep.subr.msk.mxu1 %vm240_vm2, %v137_v26  ;;  %p499_p0 = scmp.ne.s32.totalorder %s424_s27, %s498_s28  ;;  %p504_p2 = scmp.lt.s32.totalorder %s498_s28, %s498_s28 }
   0x8   :  { %480 = vmatprep.subr.msk.mxu0 %vm240_vm2, %v137_v26 }
   0x9   :  { %p505_p3 = por %p504_p2, %p503_p1 }
   0xa   :  { %466 = vmatmul.mubr.msk.f32.vlgmr.msra.gmra.mxu0 %vm24_vm0, %v20_v0 }
   0xb   :  { %481 = vmatpush3.msk.msra.mxu0 %vm240_vm2, %v137_v26  ;;  %p506_p4 = pnand %p505_p3, %p499_p0 }
  0xca   :  { %v467_v2 = vpop.f32.mrf.mxu0 }
  0xcb   :  { %v113_v5 = vmax.f32 %v467_v2, 0.0 }
  0xcc   :  { %v103_v3 = vpop.f32.mrf.mxu0 }
  0xcd   :  { %v112_v4 = vmax.f32 %v103_v3, 0.0  ;;  %v118_v7 = vsel %vm114_vm1, %v113_v5, -inf }
  0xcf   :  { %v115_v6 = vsel %vm114_vm1, %v112_v4, -inf }
  0xd0   :  { %116 = vmax.xlane.f32.xlu0 %v115_v6 }
  0xd4   :  { %119 = vmax.xlane.f32.xlu0 %v118_v7 }
 0x159   :  { %v117_v8 = vpop.xlane.xlu0 %116 }
 0x15a   :  { %v121_v9 = vsub.f32 %v112_v4, %v117_v8 }
 0x15c   :  { %v123_v10 = vmul.f32 1.442695, %v121_v9 }
 0x15d   :  { %v120_v11 = vpop.xlane.xlu0 %119 }
 0x15e   :  { %490 = vpow2.f32 %v123_v10  ;;  %v122_v12 = vsub.f32 %v113_v5, %v120_v11 }
 0x160   :  { %v125_v13 = vmul.f32 1.442695, %v122_v12 }
 0x162   :  { %492 = vpow2.f32 %v125_v13 }
 0x16b   :  { %v491_v14 = vpop.eup %490 }
 0x16c   :  { %v127_v15 = vsel %vm114_vm1, %v491_v14, 0.0 }
 0x16d   :  { %128 = vadd.xlane.f32.xlu1 %v127_v15 }
 0x16f   :  { %v493_v16 = vpop.eup %492 }
 0x170   :  { %v130_v17 = vsel %vm114_vm1, %v493_v16, 0.0 }
 0x171   :  { %131 = vadd.xlane.f32.xlu1 %v130_v17 }
 0x1f6   :  { %v129_v20 = vpop.xlane.xlu1 %128 }
 0x1f7   :  { %494 = vrcp.f32 %v129_v20 }
 0x1fa   :  { %v132_v21 = vpop.xlane.xlu1 %131 }
 0x1fb   :  { %496 = vrcp.f32 %v132_v21 }
 0x204   :  { %v495_v22 = vpop.eup %494 }
 0x205   :  { %v135_v23 = vmul.f32 %v495_v22, %v491_v14 }
 0x207   :  { %472 = vmatprep.mubr.msk.f32.mxu1 %vm114_vm1, %v135_v23 }
 0x208   :  { %v497_v24 = vpop.eup %496 }
 0x209   :  { %v136_v25 = vmul.f32 %v497_v24, %v493_v16 }
 0x20b   :  { %473 = vmatmul.mubr.msk.f32.vlgmr.msra.gmra.mxu1 %vm114_vm1, %v136_v25 }
 0x20c   :  { %476 = vmatpush3.msk.msra.mxu1 %vm240_vm2, %v137_v26 }
 0x2cb   :  { %v474_v27 = vpop.f32.mrf.mxu1 }
 0x2cc   :  { %v226_v28 = vadd.f32 %v474_v27, %v140_v18 }
 0x2cd   :  { %v216_v29 = vpop.f32.mrf.mxu1 }
 0x2ce   :  { %v225_v30 = vadd.f32 %v216_v29, %v139_v19  ;;  %323 = vrot.lane.b32.xlu1 %v226_v28, %s520_s1 }
 0x2d0   :  { %321 = vrot.lane.b32.xlu0 %v225_v30, %s520_s1  ;;  %477 = vmatprep.mubr.msk.f32.mxu1 %vm233_vm3, %v225_v30 }
 0x2d1   :  { %478 = vmatmul.mubr.msk.f32.vlgmr.msra.gmra.mxu1 %vm233_vm3, %v226_v28 }
 0x2d2   :  { %325 = vrot.lane.b32.xlu1 %v440_v31, %s521_s2 }
 0x340   :  { %v324_v33 = vpop.permute.xlu1 %323 }
 0x342   :  { %v322_v32 = vpop.permute.xlu0 %321 }
 0x343   :  { %482 = vmatprep.mubr.msk.f32.mxu0 %vm233_vm3, %v322_v32 }
 0x344   :  { %483 = vmatmul.mubr.msk.f32.vlgmr.msra.gmra.mxu0 %vm233_vm3, %v324_v33  ;;  %v326_v38 = vpop.permute.xlu1 %325 }
 0x391   :  { %v479_v34 = vpop.f32.mrf.mxu1 }
 0x392   :  { %v316_v35 = vadd.f32 %v479_v34, %v440_v31 }
 0x393   :  { %v310_v36 = vpop.f32.mrf.mxu1 }
 0x394   :  { %320 = vst.msk [vmem:[#allocation2 + $0x8] sm:$0xff] %vm24_vm0, %v316_v35  ;;  %v311_v37 = vadd.f32 %v440_v31, %v310_v36 }
 0x396   :  { %319 = vst.msk [vmem:[#allocation2] sm:$0xff] %vm24_vm0, %v311_v37 }
 0x404   :  { %v484_v39 = vpop.f32.mrf.mxu0 }
 0x405   :  { %v404_v40 = vadd.f32 %v484_v39, %v326_v38 }
 0x406   :  { %v398_v41 = vpop.f32.mrf.mxu0 }
 0x407   :  { %v399_v42 = vadd.f32 %v398_v41, %v326_v38  ;;  %411 = vrot.lane.b32.xlu0 %v404_v40, %s522_s3 }
 0x409   :  { %409 = vrot.lane.b32.xlu1 %v399_v42, %s522_s3 }
 0x479   :  { %v412_v43 = vpop.permute.xlu0 %411 }
 0x47a   :  { %417 = vst.msk [vmem:[#allocation2 + $0x8] sm:$0xff] %vm415_vm4, %v412_v43 }
 0x47b   :  { %v410_v44 = vpop.permute.xlu1 %409 }
 0x47c   :  { %416 = vst.msk [vmem:[#allocation2] sm:$0xff] %vm415_vm4, %v410_v44 }
 0x47d   :  { %509 = shalt.err (!%p506_p4)
}
 0x47e   :  { %s524_s29 = smov 128  }
 0x47f   :  { %429 = dma.vmem_to_hbm [thread:$0]  %s424_s27, 256, %s589_s4, [#allocation3], %s524_s29, %s524_s29, %s522_s3  }
 0x480   :  { %518 = dma.done.wait [#allocation3], 256  }
 0x481   :  { %519 = vsyncadd [#allocation3], 4294967040 }
 0x482   :  { %433 = vsyncpa [#allocation3], 1 }

</bundles_post_ra>
